<compile_context>
chip_gen: v5e
topology: v5e:2x2
jax: 0.10.0
libtpu: 0.0.40
codegen_flags: <defaults>
</compile_context>

<pallas_src>
import functools

import jax
import jax.numpy as jnp
from jax.experimental import pallas as pl
from jax.experimental.pallas import tpu as pltpu


def _cdiv(a, b):
    return -(-a // b)


def _round_up(x, m):
    return _cdiv(x, m) * m


def _rope_cache_kernel(rows_per_group, inv_freq_ref, lane_off_ref,
                       cos_ref, sin_ref):
    """One grid step computes a (block_rows, lane_width) lane-dense tile.

    rows_per_group : python int, positions packed along the lane axis
    inv_freq_ref   : (1, lane_width) f32, inv_freq duplicated/tiled to width
    lane_off_ref   : (1, lane_width) f32, per-lane position offset (l // dim)
    cos_ref/sin_ref: (block_rows, lane_width) output tiles (target dtype)
    """
    i = pl.program_id(0)
    block_rows, lane_width = cos_ref.shape

    # Global position of element (s, l):
    #   pos = (i * block_rows + s) * rows_per_group + (l // dim)
    # lane_off_ref already holds (l // dim), so only a sublane iota is needed.
    row0 = (i * (block_rows * rows_per_group)).astype(jnp.float32)
    sub = jax.lax.broadcasted_iota(jnp.int32, (block_rows, lane_width), 0)
    pos = row0 + sub.astype(jnp.float32) * float(rows_per_group) + lane_off_ref[...]

    # emb = cat(freqs, freqs) was folded into inv_freq_ref in the wrapper, so
    # this is a single full-width VPU broadcast-multiply (no XLU concat).
    freqs = pos * inv_freq_ref[...]

    cos_ref[...] = jnp.cos(freqs).astype(cos_ref.dtype)
    sin_ref[...] = jnp.sin(freqs).astype(sin_ref.dtype)


@functools.partial(jax.jit, static_argnames=("seq_len", "out_dtype"))
def _rope_cache_pallas(inv_freq, *, seq_len, out_dtype):
    """Compute cos/sin caches of shape (seq_len, dim) in `out_dtype`."""
    half = inv_freq.shape[0]
    dim = 2 * half
    inv_freq = inv_freq.astype(jnp.float32)

    # Lane-dense packing: if dim is narrower than a vreg lane row (128), pack
    # rows_per_group consecutive positions along the lane axis.
    if dim < 128 and 128 % dim == 0:
        rows_per_group = 128 // dim
    else:
        rows_per_group = 1
    lane_width = rows_per_group * dim

    # Duplicate once in plain JAX instead of concatenating every grid step.
    inv_freq_full = jnp.concatenate([inv_freq, inv_freq])               # (dim,)
    inv_freq_lane = jnp.tile(inv_freq_full, rows_per_group).reshape(1, lane_width)
    lane_off = jnp.repeat(jnp.arange(rows_per_group, dtype=jnp.float32),
                          dim).reshape(1, lane_width)                   # l // dim

    rows_needed = _cdiv(int(seq_len), rows_per_group)
    # Big blocks amortize per-step overhead; cap per-output block at ~2 MiB so
    # 2 outputs x 2 pipeline buffers stay far under the scoped-VMEM default on
    # every generation (including v7x's smaller 64 MiB VMEM).
    max_block_bytes = 2 * 1024 * 1024
    rows_cap = max(8, (max_block_bytes // (lane_width * 4)) // 8 * 8)
    block_rows = min(rows_cap, _round_up(rows_needed, 8))
    grid = _cdiv(rows_needed, block_rows)
    padded_rows = grid * block_rows

    cos, sin = pl.pallas_call(
        functools.partial(_rope_cache_kernel, rows_per_group),
        out_shape=(
            jax.ShapeDtypeStruct((padded_rows, lane_width), out_dtype),
            jax.ShapeDtypeStruct((padded_rows, lane_width), out_dtype),
        ),
        grid_spec=pltpu.PrefetchScalarGridSpec(
            num_scalar_prefetch=0,
            grid=(grid,),
            in_specs=[
                pl.BlockSpec((1, lane_width), lambda i: (0, 0)),
                pl.BlockSpec((1, lane_width), lambda i: (0, 0)),
            ],
            out_specs=[
                pl.BlockSpec((block_rows, lane_width), lambda i: (i, 0)),
                pl.BlockSpec((block_rows, lane_width), lambda i: (i, 0)),
            ],
        ),
        compiler_params=pltpu.CompilerParams(
            dimension_semantics=("parallel",)),
    )(inv_freq_lane, lane_off)

    # Undo the lane packing (row-major reshape is layout-preserving) and trim.
    cos = cos.reshape(padded_rows * rows_per_group, dim)[:seq_len]
    sin = sin.reshape(padded_rows * rows_per_group, dim)[:seq_len]
    return cos, sin


class Qwen2RotaryEmbeddingPallas:
    """JAX/Pallas port of Qwen2RotaryEmbedding."""

    def __init__(self, dim, max_position_embeddings=2048, base=10000):
        self.dim = dim
        self.max_position_embeddings = max_position_embeddings
        self.base = base
        # Faithful to the reference: inv_freq = 1 / base ** arange(0, dim, 2).
        # TODO(synk): standard Qwen2 RoPE divides the exponent by dim
        # (base ** (arange(0, dim, 2) / dim)); as written in the reference the
        # large exponents overflow f32 to inf so those inv_freq entries become
        # exactly 0 (cos=1, sin=0).  Kept as-is to preserve forward semantics.
        exponents = jnp.arange(0, dim, 2, dtype=jnp.int32).astype(jnp.float32)
        self.inv_freq = 1.0 / jnp.power(jnp.float32(base), exponents)

        # TODO(synk): the reference passes torch.int64 as the cache dtype at
        # __init__ (which would truncate cos/sin to integers); we keep float32
        # cache semantics — forward always re-casts to x.dtype anyway.
        self.max_seq_len_cached = int(max_position_embeddings)
        self._cache = {}  # jnp.dtype -> (cos, sin) at max_seq_len_cached
        self.cos_cached, self.sin_cached = self._get_cos_sin(jnp.float32)

    def _get_cos_sin(self, dtype):
        """Per-dtype cache; the kernel emits directly in `dtype` so no extra
        full-array astype pass runs on the forward path."""
        key = jnp.dtype(dtype)
        if key not in self._cache:
            self._cache[key] = _rope_cache_pallas(
                self.inv_freq, seq_len=self.max_seq_len_cached, out_dtype=key)
        return self._cache[key]

    def _set_cos_sin_cache(self, seq_len, dtype):
        self.max_seq_len_cached = int(seq_len)
        self._cache = {}
        self.cos_cached, self.sin_cached = self._get_cos_sin(jnp.float32)
        if jnp.dtype(dtype) != jnp.dtype(jnp.float32):
            self._get_cos_sin(dtype)

    def __call__(self, x, seq_len=None):
        if seq_len is None:
            seq_len = self.max_seq_len_cached
        if seq_len > self.max_seq_len_cached:
            self._set_cos_sin_cache(seq_len, x.dtype)
        cos, sin = self._get_cos_sin(x.dtype)
        return cos[:seq_len], sin[:seq_len]


def _reference_cos_sin(inv_freq, seq_len, dtype):
    """Pure-JAX reference mirroring the PyTorch cache construction."""
    t = jnp.arange(seq_len, dtype=jnp.float32)
    freqs = jnp.outer(t, inv_freq)
    emb = jnp.concatenate([freqs, freqs], axis=1)
    return jnp.cos(emb).astype(dtype), jnp.sin(emb).astype(dtype)


if __name__ == "__main__":
    key = jax.random.PRNGKey(0)

    # Config A: small rotary dim (16) -> lane-dense packed layout (8 pos/row).
    dim, max_pos, seq_len, batch, heads = 16, 32, 8, 2, 8
    rope = Qwen2RotaryEmbeddingPallas(dim=dim,
                                      max_position_embeddings=max_pos,
                                      base=10000)
    x = jax.random.normal(key, (batch, heads, seq_len, dim), dtype=jnp.float32)

    cos, sin = rope(x, seq_len=seq_len)
    cos, sin = jax.block_until_ready((cos, sin))
    assert cos.shape == (seq_len, dim) and sin.shape == (seq_len, dim)
    assert cos.dtype == x.dtype and sin.dtype == x.dtype

    ref_cos, ref_sin = _reference_cos_sin(rope.inv_freq, seq_len, jnp.float32)
    assert jnp.allclose(cos, ref_cos, atol=1e-5), "cos mismatch vs reference"
    assert jnp.allclose(sin, ref_sin, atol=1e-5), "sin mismatch vs reference"

    # bf16 path: cache emitted directly in bf16 by the kernel.
    xb = x.astype(jnp.bfloat16)
    cos_b, sin_b = jax.block_until_ready(rope(xb, seq_len=seq_len))
    assert cos_b.dtype == jnp.bfloat16 and sin_b.dtype == jnp.bfloat16
    assert jnp.allclose(cos_b.astype(jnp.float32), ref_cos, atol=1e-2)
    assert jnp.allclose(sin_b.astype(jnp.float32), ref_sin, atol=1e-2)

    # seq_len=None uses the cached length (graceful, unlike the torch spec).
    cos_n, sin_n = jax.block_until_ready(rope(x))
    assert cos_n.shape == (max_pos, dim) and sin_n.shape == (max_pos, dim)

    # Config B: production-like rotary dim 128 (already lane-dense, rpg=1).
    rope2 = Qwen2RotaryEmbeddingPallas(dim=128, max_position_embeddings=64)
    x2 = jax.random.normal(key, (2, 4, 16, 128), dtype=jnp.float32)
    cos2, sin2 = jax.block_until_ready(rope2(x2, seq_len=16))
    ref_cos2, ref_sin2 = _reference_cos_sin(rope2.inv_freq, 16, jnp.float32)
    assert cos2.shape == (16, 128)
    assert jnp.allclose(cos2, ref_cos2, atol=1e-5)
    assert jnp.allclose(sin2, ref_sin2, atol=1e-5)

    print("KERNEL_OK")
</pallas_src>

<mosaic_0001>
module attributes {stable_mosaic.version = 11 : i64} {
  func.func @_rope_cache_kernel(%arg0: i32, %arg1: memref<1x128xf32, #tpu.memory_space<vmem>>, %arg2: memref<1x128xf32, #tpu.memory_space<vmem>>, %arg3: memref<8x128xf32, #tpu.memory_space<vmem>>, %arg4: memref<8x128xf32, #tpu.memory_space<vmem>>) attributes {dimension_semantics = [#tpu.dimension_semantics<parallel>], iteration_bounds = array<i64: 1>, scalar_prefetch = 0 : i64, scratch_operands = 0 : i64, tpu.core_type = #tpu.core_type<tc>, window_params = [{pipeline_mode = #tpu.pipeline_mode<synchronous>, transform_indices = @transform_0, window_bounds = array<i64: 1, 128>}, {pipeline_mode = #tpu.pipeline_mode<synchronous>, transform_indices = @transform_1, window_bounds = array<i64: 1, 128>}, {transform_indices = @transform_2, window_bounds = array<i64: 8, 128>}, {transform_indices = @transform_3, window_bounds = array<i64: 8, 128>}]} {
    %c64_i32 = arith.constant 64 : i32
    %0 = arith.muli %arg0, %c64_i32 : i32
    %1 = arith.sitofp %0 : i32 to f32
    %2 = tpu.iota {dimensions = array<i32: 0>} : vector<8x128xi32>
    %3 = arith.sitofp %2 : vector<8x128xi32> to vector<8x128xf32>
    %cst = arith.constant 8.000000e+00 : f32
    %4 = vector.broadcast %cst : f32 to vector<8x128xf32>
    %5 = arith.mulf %3, %4 : vector<8x128xf32>
    %6 = vector.broadcast %1 : f32 to vector<8x128xf32>
    %7 = arith.addf %6, %5 : vector<8x128xf32>
    %c0 = arith.constant 0 : index
    %c0_0 = arith.constant 0 : index
    %8 = vector.load %arg2[%c0, %c0_0] : memref<1x128xf32, #tpu.memory_space<vmem>>, vector<1x128xf32>
    %9 = vector.broadcast %8 : vector<1x128xf32> to vector<8x128xf32>
    %10 = arith.addf %7, %9 : vector<8x128xf32>
    %c0_1 = arith.constant 0 : index
    %c0_2 = arith.constant 0 : index
    %11 = vector.load %arg1[%c0_1, %c0_2] : memref<1x128xf32, #tpu.memory_space<vmem>>, vector<1x128xf32>
    %12 = vector.broadcast %11 : vector<1x128xf32> to vector<8x128xf32>
    %13 = arith.mulf %10, %12 : vector<8x128xf32>
    %14 = math.cos %13 : vector<8x128xf32>
    %c0_3 = arith.constant 0 : index
    %c0_4 = arith.constant 0 : index
    %15 = vector.load %arg3[%c0_3, %c0_4] : memref<8x128xf32, #tpu.memory_space<vmem>>, vector<8x128xf32>
    tpu.vector_store %arg3[%c0_3, %c0_4], %14 {strides = array<i32>} : memref<8x128xf32, #tpu.memory_space<vmem>>, vector<8x128xf32>,
    %16 = math.sin %13 : vector<8x128xf32>
    %c0_5 = arith.constant 0 : index
    %c0_6 = arith.constant 0 : index
    %17 = vector.load %arg4[%c0_5, %c0_6] : memref<8x128xf32, #tpu.memory_space<vmem>>, vector<8x128xf32>
    tpu.vector_store %arg4[%c0_5, %c0_6], %16 {strides = array<i32>} : memref<8x128xf32, #tpu.memory_space<vmem>>, vector<8x128xf32>,
    return
  }
  func.func @transform_0(%arg0: i32) -> (i32, i32) {
    %c0_i32 = arith.constant 0 : i32
    %c0_i32_0 = arith.constant 0 : i32
    %c0_i32_1 = arith.constant 0 : i32
    return %c0_i32, %c0_i32_0 : i32, i32
  }
  func.func @transform_1(%arg0: i32) -> (i32, i32) {
    %c0_i32 = arith.constant 0 : i32
    %c0_i32_0 = arith.constant 0 : i32
    %c0_i32_1 = arith.constant 0 : i32
    return %c0_i32, %c0_i32_0 : i32, i32
  }
  func.func @transform_2(%arg0: i32) -> (i32, i32) {
    %c0_i32 = arith.constant 0 : i32
    %c0_i32_0 = arith.constant 0 : i32
    return %arg0, %c0_i32 : i32, i32
  }
  func.func @transform_3(%arg0: i32) -> (i32, i32) {
    %c0_i32 = arith.constant 0 : i32
    %c0_i32_0 = arith.constant 0 : i32
    return %arg0, %c0_i32 : i32, i32
  }
}

</mosaic_0001>

<bundles_post_ra>
// kernel: tile.8
= control target key start
LH: loop header
LB: loop body
LE: loop exit
PB: predicated region body
PF: predicated region fallthrough
CT: control target
= control target key end

     0   :  { %s22_s0 = inlined_call_operand.vmem [shape: f32[16], index: 0, kind: input, shape index: {}]   ;;  %s23_s1 = inlined_call_operand.vmem [shape: f32[8,16], index: 1, kind: output, shape index: {}]  }
   0x1   :  { %v4_v0 = vld [vmem:[%s22_s0] ss:$0 sm:$0xff] }
   0x2   :  { %5 = vst [vmem:[%s23_s1] sm:$0xff] %v4_v0 }

// kernel: tile.9
= control target key start
LH: loop header
LB: loop body
LE: loop exit
PB: predicated region body
PF: predicated region fallthrough
CT: control target
= control target key end

     0   :  { %s67_s10 = smov 112   ;;  %s68_s11 = smov 80   ;;  %vm3_vm0 = vcmask 130048   ;;  %vm9_vm1 = vcmask 1048448   ;;  %vm15_vm2 = vcmask 917248   ;;  %vm21_vm3 = vcmask 786048   ;;  %s111_s0 = inlined_call_operand.vmem [shape: f32[8,16], index: 0, kind: input, shape index: {}]   ;;  %s112_s1 = inlined_call_operand.vmem [shape: f32[1,128], index: 1, kind: output, shape index: {}]  }
   0x1   :  { %v53_v0 = vld [vmem:[%s111_s0 + $0x7] sm:$0x1]   ;;  %v55_v1 = vld [vmem:[%s111_s0 + $0x5] sm:$0x1]   ;;  %v57_v2 = vld [vmem:[%s111_s0 + $0x3] sm:$0x1]  }
   0x2   :  { %7 = vrot.lane.b32.xlu0 %v53_v0, %s67_s10  ;;  %19 = vrot.lane.b32.xlu1 %v55_v1, %s68_s11  ;;  %s69_s14 = smov 48   ;;  %v54_v3 = vld [vmem:[%s111_s0 + $0x6] sm:$0x1]   ;;  %v56_v4 = vld [vmem:[%s111_s0 + $0x4] sm:$0x1]   ;;  %s70_s21 = smov 96  }
   0x3   :  { %31 = vrot.lane.b32.xlu2 %v57_v2, %s69_s14  ;;  %v58_v5 = vld [vmem:[%s111_s0 + $0x2] sm:$0x1]   ;;  %s71_s22 = smov 64   ;;  %s72_s23 = smov 32   ;;  %v59_v6 = vld [vmem:[%s111_s0 + $0x1] sm:$0x1]  }
   0x4   :  { %s73_s26 = smov 16   ;;  %v2_v7 = vld [vmem:[%s111_s0] sm:$0x1]   ;;  %vm27_vm4 = vcmask 654848   ;;  %vm33_vm5 = vcmask 523648   ;;  %vm39_vm6 = vcmask 392448  }
   0x5   :  { %4 = vst.msk [vmem:[#allocation0] sm:$0x1] %vm3_vm0, %v2_v7   ;;  %vm45_vm7 = vcmask 261248  }
   0xa   :  { %13 = vrot.lane.b32.xlu0 %v54_v3, %s70_s21  ;;  %25 = vrot.lane.b32.xlu1 %v56_v4, %s71_s22 }
   0xb   :  { %37 = vrot.lane.b32.xlu2 %v58_v5, %s72_s23 }
  0x12   :  { %43 = vrot.lane.b32.xlu0 %v59_v6, %s73_s26 }
  0x5d   :  { %v32_v8 = vpop.permute.xlu2 %31  }
  0x65   :  { %v38_v9 = vpop.permute.xlu2 %37  }
  0x74   :  { %v8_v10 = vpop.permute.xlu0 %7   ;;  %v20_v11 = vpop.permute.xlu1 %19  }
  0x75   :  { %10 = vst.msk [vmem:[#allocation0] sm:$0x1] %vm9_vm1, %v8_v10  }
  0x7c   :  { %v14_v12 = vpop.permute.xlu0 %13   ;;  %v26_v13 = vpop.permute.xlu1 %25  }
  0x7d   :  { %16 = vst.msk [vmem:[#allocation0] sm:$0x1] %vm15_vm2, %v14_v12  }
  0x7e   :  { %22 = vst.msk [vmem:[#allocation0] sm:$0x1] %vm21_vm3, %v20_v11  }
  0x7f   :  { %28 = vst.msk [vmem:[#allocation0] sm:$0x1] %vm27_vm4, %v26_v13  }
  0x80   :  { %34 = vst.msk [vmem:[#allocation0] sm:$0x1] %vm33_vm5, %v32_v8  }
  0x81   :  { %40 = vst.msk [vmem:[#allocation0] sm:$0x1] %vm39_vm6, %v38_v9  }
  0x84   :  { %v44_v14 = vpop.permute.xlu0 %43  }
  0x85   :  { %46 = vst.msk [vmem:[#allocation0] sm:$0x1] %vm45_vm7, %v44_v14  }
  0x8c   :  { %v49_v15 = vld [vmem:[#allocation0] sm:$0x1] }
  0x8d   :  { %52 = vst [vmem:[%s112_s1] sm:$0x1] %v49_v15 }

// kernel: _rope_cache_pallas.1
= control target key start
LH: loop header
LB: loop body
LE: loop exit
PB: predicated region body
PF: predicated region fallthrough
CT: control target
= control target key end

     0   :  { %v15_v0 = vlaneseq  ;;  %v365_v19 = vmov 683565275   ;;  %v366_v21 = vmov 2475754826   ;;  %v367_v23 = vmov 2131351028   ;;  %s450_s0 = inlined_call_operand.vmem [shape: f32[1,128], index: 0, kind: input, shape index: {}]   ;;  %s451_s1 = inlined_call_operand.vmem [shape: f32[1,128], index: 1, kind: input, shape index: {}]   ;;  %s452_s2 = inlined_call_operand.vmem [shape: f32[8,128], index: 2, kind: output, shape index: {0}]   ;;  %s453_s3 = inlined_call_operand.vmem [shape: f32[8,128], index: 3, kind: output, shape index: {1}]  }
   0x1   :  { %v363_v3 = vld [vmem:[%s451_s1] ss:$0 sm:$0xff]  ;;  %v368_v25 = vmov 2102212464   ;;  %v369_v27 = vmov 920167782  }
   0x2   :  { %v16_v1 = vshrl.u32 %v15_v0, 7  ;;  %v364_v5 = vld [vmem:[%s450_s0] ss:$0 sm:$0xff]  ;;  %v370_v33 = vmov 1326507024  }
   0x4   :  { %v17_v2 = vcvt.s32.f32 %v16_v1 }
   0x6   :  { %v18_v4 = vmul.f32 8.0, %v17_v2 }
   0x8   :  { %v25_v6 = vadd.f32 %v363_v3, %v18_v4 }
   0xa   :  { %v398_v7 = vmul.f32 %v364_v5, %v25_v6 }
   0xc   :  { %v34_v8 = vand.u32 2139095040, %v398_v7  ;;  %v31_v10 = vand.u32 2147483647, %v398_v7  ;;  %vm33_vm12 = vcmp.lt.s32.totalorder %v398_v7, 0 }
   0xe   :  { %v35_v9 = vshrl.u32 %v34_v8, 23  ;;  %v38_v13 = vand.u32 8388607, %v31_v10  ;;  %v371_v8 = vmov 0   ;;  %vm32_vm13 = vcmp.le.f32.partialorder %v31_v10, 0.7853982 }
  0x10   :  { %v350_v11 = vadd.s32 4294967169, %v35_v9  ;;  %v39_v16 = vor.u32 8388608, %v38_v13 }
  0x12   :  { %v41_v12 = vadd.s32 1, %v350_v11  ;;  %v407_v35 = vshll.u32 %v39_v16, 8 }
  0x14   :  { %vm42_vm0 = vcmp.gt.s32.totalorder %v41_v12, 0  ;;  %v80_v47 = vand.u32 65535, %v407_v35  ;;  %v81_v48 = vshrl.u32 %v407_v35, 16 }
  0x15   :  { %v43_v14 = vsel %vm42_vm0, %v41_v12, 0 }
  0x16   :  { %v45_v15 = vand.u32 31, %v43_v14  ;;  %v404_v17 = vshrl.u32 %v43_v14, 5 }
  0x18   :  { %v46_v18 = vsub.s32 32, %v45_v15  ;;  %v48_v20 = vshll.u32 %v365_v19, %v45_v15  ;;  %v51_v22 = vshll.u32 %v366_v21, %v45_v15  ;;  %v54_v24 = vshll.u32 %v367_v23, %v45_v15 }
  0x19   :  { %v57_v26 = vshll.u32 %v368_v25, %v45_v15  ;;  %v60_v28 = vshll.u32 %v369_v27, %v45_v15  ;;  %vm63_vm1 = vcmp.lt.s32.totalorder %v404_v17, 1  ;;  %vm66_vm2 = vcmp.lt.s32.totalorder %v404_v17, 4 }
  0x1a   :  { %v49_v29 = vshrl.u32 %v366_v21, %v46_v18  ;;  %v52_v30 = vshrl.u32 %v367_v23, %v46_v18  ;;  %v55_v31 = vshrl.u32 %v368_v25, %v46_v18  ;;  %v58_v32 = vshrl.u32 %v369_v27, %v46_v18 }
  0x1b   :  { %v61_v34 = vshrl.u32 %v370_v33, %v46_v18  ;;  %vm65_vm3 = vcmp.lt.s32.totalorder %v404_v17, 3  ;;  %vm64_vm4 = vcmp.lt.s32.totalorder %v404_v17, 2  ;;  %v47_v55 = vshrl.u32 %v365_v19, %v46_v18 }
  0x1c   :  { %v50_v36 = vor.u32 %v49_v29, %v48_v20  ;;  %v53_v37 = vor.u32 %v52_v30, %v51_v22  ;;  %v56_v38 = vor.u32 %v55_v31, %v54_v24  ;;  %v59_v39 = vor.u32 %v58_v32, %v57_v26 }
  0x1d   :  { %v62_v40 = vor.u32 %v61_v34, %v60_v28 }
  0x1e   :  { %v71_v41 = vsel %vm63_vm1, %v50_v36, %v53_v37  ;;  %v75_v42 = vsel %vm63_vm1, %v53_v37, %v56_v38  ;;  %v72_v43 = vsel %vm66_vm2, %v59_v39, 920167782  ;;  %v67_v4 = vsel %vm63_vm1, %v47_v55, %v50_v36 }
  0x1f   :  { %v76_v44 = vsel %vm66_vm2, %v62_v40, 1326507024  ;;  %v73_v45 = vsel %vm65_vm3, %v56_v38, %v72_v43  ;;  %v68_v6 = vsel %vm66_vm2, %v56_v38, 2102212464 }
  0x20   :  { %v77_v46 = vsel %vm65_vm3, %v59_v39, %v76_v44  ;;  %v74_v49 = vsel %vm64_vm4, %v71_v41, %v73_v45  ;;  %v69_v19 = vsel %vm65_vm3, %v53_v37, %v68_v6 }
  0x21   :  { %v78_v50 = vsel %vm64_vm4, %v75_v42, %v77_v46  ;;  %v104_v53 = vand.u32 65535, %v74_v49  ;;  %v105_v54 = vshrl.u32 %v74_v49, 16  ;;  %v70_v27 = vsel %vm64_vm4, %v67_v4, %v69_v19 }
  0x22   :  { %v82_v51 = vand.u32 65535, %v78_v50  ;;  %v83_v52 = vshrl.u32 %v78_v50, 16  ;;  %v124_v31 = vmul.u32 %v407_v35, %v70_v27  ;;  %vm174_vm4 = vweird.f32 %v398_v7 }
  0x23   :  { %v106_v59 = vmul.u32 %v104_v53, %v80_v47  ;;  %v107_v60 = vmul.u32 %v105_v54, %v80_v47  ;;  %v108_v61 = vmul.u32 %v104_v53, %v81_v48  ;;  %v109_v1 = vmul.u32 %v105_v54, %v81_v48 }
  0x24   :  { %v84_v56 = vmul.u32 %v82_v51, %v80_v47  ;;  %v85_v57 = vmul.u32 %v83_v52, %v80_v47  ;;  %v86_v58 = vmul.u32 %v82_v51, %v81_v48  ;;  %v87_v62 = vmul.u32 %v83_v52, %v81_v48 }
  0x25   :  { %v110_v2 = vshll.u32 %v107_v60, 16  ;;  %v112_v3 = vshll.u32 %v108_v61, 16  ;;  %v111_v16 = vshrl.u32 %v107_v60, 16  ;;  %v113_v23 = vshrl.u32 %v108_v61, 16 }
  0x26   :  { %v88_v63 = vshll.u32 %v85_v57, 16  ;;  %v90_v0 = vshll.u32 %v86_v58, 16  ;;  %v89_v12 = vshrl.u32 %v85_v57, 16  ;;  %v91_v20 = vshrl.u32 %v86_v58, 16 }
  0x27   :  { %vm114_vm6 = vc.u32 %v106_v59, %v110_v2  ;;  %v116_v11 = vadd.s32 %v110_v2, %v106_v59 }
  0x28   :  { %vm92_vm5 = vc.u32 %v84_v56, %v88_v63  ;;  %v94_v5 = vadd.s32 %v88_v63, %v84_v56  ;;  %v115_v14 = vsel %vm114_vm6, 1, %v371_v8 }
  0x29   :  { %v93_v9 = vsel %vm92_vm5, 1, %v371_v8  ;;  %v117_v18 = vadd.s32 %v115_v14, %v109_v1  ;;  %vm118_vm8 = vc.u32 %v116_v11, %v112_v3  ;;  %v120_v26 = vadd.s32 %v116_v11, %v112_v3 }
  0x2a   :  { %v95_v13 = vadd.s32 %v93_v9, %v87_v62  ;;  %vm96_vm7 = vc.u32 %v94_v5, %v90_v0  ;;  %v119_v22 = vsel %vm118_vm8, 1, %v371_v8 }
  0x2b   :  { %v97_v15 = vsel %vm96_vm7, 1, %v371_v8  ;;  %v121_v24 = vadd.s32 %v119_v22, %v117_v18 }
  0x2c   :  { %v99_v21 = vadd.s32 %v97_v15, %v95_v13 }
  0x2d   :  { %v122_v28 = vadd.s32 %v121_v24, %v111_v16 }
  0x2e   :  { %v100_v25 = vadd.s32 %v99_v21, %v89_v12 }
  0x2f   :  { %v123_v30 = vadd.s32 %v122_v28, %v113_v23 }
  0x30   :  { %v101_v29 = vadd.s32 %v100_v25, %v91_v20 }
  0x31   :  { %v127_v32 = vadd.s32 1, %v123_v30 }
  0x32   :  { %vm126_vm9 = vc.u32 %v101_v29, %v120_v26  ;;  %v125_v17 = vadd.s32 %v120_v26, %v101_v29 }
  0x33   :  { %v128_v33 = vsel %vm126_vm9, %v127_v32, %v123_v30 }
  0x34   :  { %v129_v34 = vadd.s32 %v128_v33, %v124_v31 }
  0x36   :  { %v130_v36 = vadd.s32 536870912, %v129_v34 }
  0x38   :  { %v131_v37 = vshrl.u32 %v130_v36, 30 }
  0x3a   :  { %v132_v38 = vshll.u32 %v131_v37, 30  ;;  %v155_v55 = vsub.s32 4, %v131_v37 }
  0x3c   :  { %v133_v39 = vsub.s32 %v129_v34, %v132_v38  ;;  %v156_v58 = vsel %vm33_vm12, %v155_v55, %v131_v37 }
  0x3d   :  { %v158_v61 = vsel %vm32_vm13, 0, %v156_v58 }
  0x3e   :  { %vm134_vm10 = vcmp.lt.s32.totalorder %v133_v39, 0  ;;  %v135_v40 = vsub.s32 0, %v133_v39  ;;  %v330_v2 = vadd.s32 3, %v158_v61  ;;  %v175_v8 = vand.u32 3, %v158_v61 }
  0x40   :  { %v136_v41 = vsel %vm134_vm10, %v135_v40, %v133_v39  ;;  %v331_v9 = vand.u32 3, %v330_v2  ;;  %vm180_vm14 = vcmp.eq.s32.totalorder %v175_v8, 2  ;;  %vm176_vm0 = vcmp.lt.s32.totalorder %v175_v8, 2 }
  0x41   :  { %v137_v42 = vclz %v136_v41  ;;  %vm177_vm1 = vcmp.eq.s32.totalorder %v175_v8, 0 }
  0x42   :  { %vm336_vm15 = vcmp.eq.s32.totalorder %v331_v9, 2  ;;  %vm333_vm2 = vcmp.eq.s32.totalorder %v331_v9, 0  ;;  %vm332_vm3 = vcmp.lt.s32.totalorder %v331_v9, 2 }
  0x43   :  { %v351_v43 = vadd.s32 4294967294, %v137_v42 }
  0x45   :  { %vm352_vm11 = vcmp.lt.s32.totalorder %v351_v43, 0 }
  0x46   :  { %v140_v44 = vsel %vm352_vm11, 0, %v351_v43 }
  0x47   :  { %v141_v45 = vsub.s32 32, %v140_v44  ;;  %v142_v46 = vshll.u32 %v133_v39, %v140_v44  ;;  %v145_v47 = vsub.s32 4294967266, %v140_v44 }
  0x49   :  { %v143_v35 = vshrl.u32 %v125_v17, %v141_v45  ;;  %v146_v48 = vadd.s32 127, %v145_v47 }
  0x4b   :  { %v144_v49 = vor.u32 %v143_v35, %v142_v46  ;;  %v147_v50 = vshll.u32 %v146_v48, 23 }
  0x4d   :  { %v148_v51 = vor.u32 4788187, %v147_v50  ;;  %v151_v52 = vcvt.s32.f32 %v144_v49 }
  0x4f   :  { %v149_v53 = vand.u32 2147483647, %v148_v51 }
  0x51   :  { %v152_v54 = vmul.f32 %v151_v52, %v149_v53 }
  0x53   :  { %v153_v56 = vxor.u32 2147483648, %v152_v54 }
  0x55   :  { %v154_v57 = vsel %vm33_vm12, %v153_v56, %v152_v54 }
  0x56   :  { %v157_v59 = vsel %vm32_vm13, %v398_v7, %v154_v57 }
  0x57   :  { %v159_v60 = vmul.f32 %v157_v59, %v157_v59 }
  0x59   :  { %v160_v62 = vmul.f32 -0.001358992, %v159_v60  ;;  %v167_v63 = vmul.f32 -0.00019511016, %v159_v60 }
  0x5b   :  { %v161_v0 = vadd.f32 0.041655596, %v160_v62  ;;  %v168_v1 = vadd.f32 0.008332121, %v167_v63 }
  0x5d   :  { %v162_v3 = vmul.f32 %v161_v0, %v159_v60  ;;  %v169_v4 = vmul.f32 %v168_v1, %v159_v60 }
  0x5f   :  { %v163_v5 = vadd.f32 -0.4999988, %v162_v3  ;;  %v170_v6 = vadd.f32 -0.16666654, %v169_v4 }
  0x61   :  { %v164_v11 = vmul.f32 %v163_v5, %v159_v60  ;;  %v171_v10 = vmul.f32 %v170_v6, %v159_v60 }
  0x63   :  { %v165_v12 = vadd.f32 1.0, %v164_v11  ;;  %v172_v13 = vadd.f32 1.0, %v171_v10 }
  0x65   :  { %v173_v14 = vmul.f32 %v172_v13, %v157_v59  ;;  %v181_v15 = vxor.u32 2147483648, %v165_v12 }
  0x67   :  { %v178_v16 = vxor.u32 2147483648, %v173_v14  ;;  %v182_v18 = vsel %vm180_vm14, %v181_v15, %v173_v14  ;;  %v338_v19 = vsel %vm336_vm15, %v181_v15, %v173_v14 }
  0x69   :  { %v179_v20 = vsel %vm177_vm1, %v165_v12, %v178_v16  ;;  %v335_v21 = vsel %vm333_vm2, %v165_v12, %v178_v16 }
  0x6a   :  { %v183_v22 = vsel %vm176_vm0, %v179_v20, %v182_v18  ;;  %v339_v23 = vsel %vm332_vm3, %v335_v21, %v338_v19 }
  0x6b   :  { %v184_v24 = vsel %vm174_vm4, nan, %v183_v22  ;;  %v340_v25 = vsel %vm174_vm4, nan, %v339_v23 }
  0x6c   :  { %185 = vst [vmem:[%s452_s2] sm:$0xff] %v184_v24 }
  0x6d   :  { %341 = vst [vmem:[%s453_s3] sm:$0xff] %v340_v25 }

</bundles_post_ra>
